<compile_context>
chip_gen: v5e
topology: v5e:2x2
jax: 0.10.0
libtpu: 0.0.40
codegen_flags: <defaults>
</compile_context>

<pallas_src>
import jax
import jax.numpy as jnp
from jax import lax
from jax.experimental import pallas as pl
from jax.experimental.pallas import tpu as pltpu


# ----------------------------- Pallas kernel ------------------------------ #
def _lstm_layer_kernel(x_ref, h_ref, w_ref, b_ref, c_ref, h_out_ref, c_out_ref):
    """x_ref,h_ref:(B,F)  w_ref:(N,F,4F)  b_ref:(N,B,4F)  c_ref,c_out_ref:(N,B,F).

    Gate column layout along the 4F lane axis: [forget | in_sig | in_tanh | out_sig].
    Columns for the three sigmoid branches are pre-scaled by 0.5 at pack time.
    """
    F = x_ref.shape[-1]
    n_cells = w_ref.shape[0]
    x = x_ref[...]

    def cell_step(i, h):
        z = x + h
        # one fused lane-dense MXU matmul for all four gate pre-activations
        y = jnp.dot(z, w_ref[i], preferred_element_type=jnp.float32) + b_ref[i]  # (B,4F)
        t = jnp.tanh(y)            # single full-width EUP push for every gate
        u = 0.5 + 0.5 * t          # = sigmoid(2*y) for the pre-halved quarters

        f_gate = u[:, 0 * F:1 * F]      # ForgetGate           sigmoid
        i_sig  = u[:, 1 * F:2 * F]      # InputGate            sigmoid branch
        i_tanh = t[:, 2 * F:3 * F]      # InputGate            tanh branch (unscaled)
        o_sig  = u[:, 3 * F:4 * F]      # OutputGate           sigmoid

        c_prev = c_ref[i]               # OLD cell state (read BEFORE the aliased write)
        h_new = jnp.tanh(c_prev) * o_sig            # new hidden state (OutputGate)
        c_out_ref[i] = c_prev * f_gate + i_sig * i_tanh
        return h_new

    h_final = lax.fori_loop(0, n_cells, cell_step, h_ref[...], unroll=True)
    h_out_ref[...] = h_final


# ------------------------------- Wrapper ----------------------------------- #
def lstm_layer_forward(inputs, hidden_state, w_packed, b_packed, c_packed):
    """inputs, hidden_state: [B,F]; w_packed: [N,F,4F]; b_packed: [N,B,4F]; c_packed: [N,B,F]."""
    B, F = inputs.shape
    N = w_packed.shape[0]

    vmem = lambda: pl.BlockSpec(memory_space=pltpu.MemorySpace.VMEM)
    h_out, c_out = pl.pallas_call(
        _lstm_layer_kernel,
        out_shape=(
            jax.ShapeDtypeStruct((B, F), jnp.float32),
            jax.ShapeDtypeStruct((N, B, F), jnp.float32),
        ),
        in_specs=[vmem() for _ in range(5)],
        out_specs=(vmem(), vmem()),
        # alias cell-state input (arg 4) to cell-state output (output 1):
        # matches the PyTorch in-place Parameter.data mutation.
        input_output_aliases={4: 1},
    )(inputs, hidden_state, w_packed, b_packed, c_packed)
    return h_out, c_out


lstm_layer_forward_jit = jax.jit(lstm_layer_forward)


# --------------------------- Parameter packing ----------------------------- #
def pack_params(cells):
    """One-time packing (outside the hot path).

    Per cell, the four gate projections are concatenated along the output
    (lane) axis into a single [F, 4F] slab so each cell issues ONE lane-dense
    (B,F)@(F,4F) MXU matmul.  The sigmoid-branch columns (forget, in_sig,
    out_sig) are pre-scaled by 0.5 so sigmoid(x) = 0.5*(1 + tanh(0.5*x)) can be
    recovered from a single full-width tanh in the kernel.  Biases are
    pre-broadcast to (N, B, 4F) so the kernel does a plain full-vreg add.
    """
    N = len(cells)
    B, F = cells[0]["c"].shape
    w_packed = jnp.stack(
        [jnp.concatenate([0.5 * c["wf"], 0.5 * c["wis"], c["wit"], 0.5 * c["wos"]], axis=1)
         for c in cells])                                                # [N, F, 4F]
    b_rows = jnp.stack(
        [jnp.concatenate([0.5 * c["bf"], 0.5 * c["bis"], c["bit"], 0.5 * c["bos"]], axis=1)
         for c in cells])                                                # [N, 1, 4F]
    b_packed = jnp.broadcast_to(b_rows, (N, B, 4 * F))                   # [N, B, 4F]
    c_packed = jnp.stack([c["c"] for c in cells])                        # [N, B, F]
    return w_packed, b_packed, c_packed


# --------------------------- Parameter creation ---------------------------- #
def make_params(n_features, batch_size, n_cells, key):
    def xavier(k, fan_in, fan_out):
        # nn.init.xavier_uniform_ (as in LSTMLayer.initialise_weights),
        # stored pre-transposed to [in, out] so the kernel does z @ W.
        bound = jnp.sqrt(6.0 / (fan_in + fan_out))
        return jax.random.uniform(k, (fan_in, fan_out), jnp.float32, -bound, bound)

    def bias(k, fan_in, fan_out):
        # default nn.Linear bias init: U(-1/sqrt(fan_in), 1/sqrt(fan_in))
        bound = 1.0 / jnp.sqrt(fan_in)
        return jax.random.uniform(k, (1, fan_out), jnp.float32, -bound, bound)

    cells = []
    keys = jax.random.split(key, n_cells)
    for i in range(n_cells):
        ks = jax.random.split(keys[i], 9)
        cells.append(dict(
            wf=xavier(ks[0], n_features, n_features),  bf=bias(ks[1], n_features, n_features),
            wis=xavier(ks[2], n_features, n_features), bis=bias(ks[3], n_features, n_features),
            wit=xavier(ks[4], n_features, n_features), bit=bias(ks[5], n_features, n_features),
            wos=xavier(ks[6], n_features, n_features), bos=bias(ks[7], n_features, n_features),
            # persistent per-cell cell_state; a fresh module holds zeros (which
            # would make every hidden output exactly 0) — use a nonzero state
            # here so the numerical check against the reference is non-trivial.
            c=jax.random.normal(ks[8], (batch_size, n_features), jnp.float32),
        ))
    return cells


# --------------------------- Pure-JAX reference ---------------------------- #
def lstm_layer_reference(inputs, hidden_state, cells):
    h = hidden_state
    new_cs = []
    for p in cells:
        z = inputs + h
        f = jax.nn.sigmoid(z @ p["wf"] + p["bf"])
        ig = jax.nn.sigmoid(z @ p["wis"] + p["bis"]) * jnp.tanh(z @ p["wit"] + p["bit"])
        og = jnp.tanh(p["c"]) * jax.nn.sigmoid(z @ p["wos"] + p["bos"])
        new_cs.append(p["c"] * f + ig)
        h = og
    return h, jnp.stack(new_cs)


# --------------------------------- Main ------------------------------------ #
if __name__ == "__main__":
    n_features = 32       # hyperparameters['n_features']
    batch_size = 8        # hyperparameters['batch_size']
    n_lstm_cells = 3      # hyperparameters['n_lstm_cells']

    key = jax.random.PRNGKey(0)
    k_x, k_h, k_p = jax.random.split(key, 3)
    inputs = jax.random.normal(k_x, (batch_size, n_features), jnp.float32)
    hidden_state = jax.random.normal(k_h, (batch_size, n_features), jnp.float32)
    cells = make_params(n_features, batch_size, n_lstm_cells, k_p)

    # pack once (outside the hot path), then call the jitted forward
    w_packed, b_packed, c_packed = pack_params(cells)
    h_out, c_out = lstm_layer_forward_jit(inputs, hidden_state, w_packed, b_packed, c_packed)
    h_out = jax.block_until_ready(h_out)
    c_out = jax.block_until_ready(c_out)

    h_ref, c_ref = lstm_layer_reference(inputs, hidden_state, cells)
    assert h_out.shape == (batch_size, n_features)
    assert c_out.shape == (n_lstm_cells, batch_size, n_features)
    assert jnp.allclose(h_out, h_ref, atol=1e-4, rtol=1e-4), (h_out, h_ref)
    assert jnp.allclose(c_out, c_ref, atol=1e-4, rtol=1e-4), (c_out, c_ref)

    print("KERNEL_OK")
</pallas_src>

<mosaic_0001>
module attributes {stable_mosaic.version = 11 : i64} {
  func.func @_lstm_layer_kernel(%arg0: memref<8x32xf32, #tpu.memory_space<vmem>>, %arg1: memref<8x32xf32, #tpu.memory_space<vmem>>, %arg2: memref<3x32x128xf32, #tpu.memory_space<vmem>>, %arg3: memref<3x8x128xf32, #tpu.memory_space<vmem>>, %arg4: memref<3x8x32xf32, #tpu.memory_space<vmem>>, %arg5: memref<8x32xf32, #tpu.memory_space<vmem>>, %arg6: memref<3x8x32xf32, #tpu.memory_space<vmem>>) attributes {dimension_semantics = [], scalar_prefetch = 0 : i64, scratch_operands = 0 : i64, tpu.core_type = #tpu.core_type<tc>} {
    %c0 = arith.constant 0 : index
    %c0_0 = arith.constant 0 : index
    %0 = vector.load %arg0[%c0, %c0_0] : memref<8x32xf32, #tpu.memory_space<vmem>>, vector<8x32xf32>
    %c0_1 = arith.constant 0 : index
    %c0_2 = arith.constant 0 : index
    %1 = vector.load %arg1[%c0_1, %c0_2] : memref<8x32xf32, #tpu.memory_space<vmem>>, vector<8x32xf32>
    %c0_i32 = arith.constant 0 : i32
    %2 = arith.addf %0, %1 : vector<8x32xf32>
    %3 = arith.index_cast %c0_i32 : i32 to index
    %c0_3 = arith.constant 0 : index
    %c0_4 = arith.constant 0 : index
    %4 = vector.load %arg2[%3, %c0_3, %c0_4] : memref<3x32x128xf32, #tpu.memory_space<vmem>>, vector<1x32x128xf32>
    %5 = vector.shape_cast %4 : vector<1x32x128xf32> to vector<32x128xf32>
    %cst = arith.constant dense<0.000000e+00> : vector<8x128xf32>
    %6 = tpu.matmul %2, %5, %cst {dimension_numbers = #tpu.dot_dimension_numbers<[1], [0], [0], [1], [0, 0, 1, 1], [], []>} : vector<8x32xf32>, vector<32x128xf32>, vector<8x128xf32> -> vector<8x128xf32>
    %7 = arith.index_cast %c0_i32 : i32 to index
    %c0_5 = arith.constant 0 : index
    %c0_6 = arith.constant 0 : index
    %8 = vector.load %arg3[%7, %c0_5, %c0_6] : memref<3x8x128xf32, #tpu.memory_space<vmem>>, vector<1x8x128xf32>
    %9 = vector.shape_cast %8 : vector<1x8x128xf32> to vector<8x128xf32>
    %10 = arith.addf %6, %9 : vector<8x128xf32>
    %11 = math.tanh %10 : vector<8x128xf32>
    %cst_7 = arith.constant 5.000000e-01 : f32
    %12 = vector.broadcast %cst_7 : f32 to vector<8x128xf32>
    %13 = arith.mulf %12, %11 : vector<8x128xf32>
    %cst_8 = arith.constant 5.000000e-01 : f32
    %14 = vector.broadcast %cst_8 : f32 to vector<8x128xf32>
    %15 = arith.addf %14, %13 : vector<8x128xf32>
    %16 = vector.extract_strided_slice %15 {offsets = [0, 0], sizes = [8, 32], strides = [1, 1]} : vector<8x128xf32> to vector<8x32xf32>
    %17 = vector.extract_strided_slice %15 {offsets = [0, 32], sizes = [8, 32], strides = [1, 1]} : vector<8x128xf32> to vector<8x32xf32>
    %18 = vector.extract_strided_slice %11 {offsets = [0, 64], sizes = [8, 32], strides = [1, 1]} : vector<8x128xf32> to vector<8x32xf32>
    %19 = vector.extract_strided_slice %15 {offsets = [0, 96], sizes = [8, 32], strides = [1, 1]} : vector<8x128xf32> to vector<8x32xf32>
    %20 = arith.index_cast %c0_i32 : i32 to index
    %c0_9 = arith.constant 0 : index
    %c0_10 = arith.constant 0 : index
    %21 = vector.load %arg4[%20, %c0_9, %c0_10] : memref<3x8x32xf32, #tpu.memory_space<vmem>>, vector<1x8x32xf32>
    %22 = vector.shape_cast %21 : vector<1x8x32xf32> to vector<8x32xf32>
    %23 = math.tanh %22 : vector<8x32xf32>
    %24 = arith.mulf %23, %19 : vector<8x32xf32>
    %25 = arith.mulf %22, %16 : vector<8x32xf32>
    %26 = arith.mulf %17, %18 : vector<8x32xf32>
    %27 = arith.addf %25, %26 : vector<8x32xf32>
    %28 = arith.index_cast %c0_i32 : i32 to index
    %c0_11 = arith.constant 0 : index
    %c0_12 = arith.constant 0 : index
    %29 = vector.load %arg6[%28, %c0_11, %c0_12] : memref<3x8x32xf32, #tpu.memory_space<vmem>>, vector<1x8x32xf32>
    %30 = vector.shape_cast %29 : vector<1x8x32xf32> to vector<8x32xf32>
    %31 = vector.shape_cast %27 : vector<8x32xf32> to vector<1x8x32xf32>
    tpu.vector_store %arg6[%28, %c0_11, %c0_12], %31 {strides = array<i32>} : memref<3x8x32xf32, #tpu.memory_space<vmem>>, vector<1x8x32xf32>,
    %c1_i32 = arith.constant 1 : i32
    %32 = arith.addf %0, %24 : vector<8x32xf32>
    %33 = arith.index_cast %c1_i32 : i32 to index
    %c0_13 = arith.constant 0 : index
    %c0_14 = arith.constant 0 : index
    %34 = vector.load %arg2[%33, %c0_13, %c0_14] : memref<3x32x128xf32, #tpu.memory_space<vmem>>, vector<1x32x128xf32>
    %35 = vector.shape_cast %34 : vector<1x32x128xf32> to vector<32x128xf32>
    %cst_15 = arith.constant dense<0.000000e+00> : vector<8x128xf32>
    %36 = tpu.matmul %32, %35, %cst_15 {dimension_numbers = #tpu.dot_dimension_numbers<[1], [0], [0], [1], [0, 0, 1, 1], [], []>} : vector<8x32xf32>, vector<32x128xf32>, vector<8x128xf32> -> vector<8x128xf32>
    %37 = arith.index_cast %c1_i32 : i32 to index
    %c0_16 = arith.constant 0 : index
    %c0_17 = arith.constant 0 : index
    %38 = vector.load %arg3[%37, %c0_16, %c0_17] : memref<3x8x128xf32, #tpu.memory_space<vmem>>, vector<1x8x128xf32>
    %39 = vector.shape_cast %38 : vector<1x8x128xf32> to vector<8x128xf32>
    %40 = arith.addf %36, %39 : vector<8x128xf32>
    %41 = math.tanh %40 : vector<8x128xf32>
    %cst_18 = arith.constant 5.000000e-01 : f32
    %42 = vector.broadcast %cst_18 : f32 to vector<8x128xf32>
    %43 = arith.mulf %42, %41 : vector<8x128xf32>
    %cst_19 = arith.constant 5.000000e-01 : f32
    %44 = vector.broadcast %cst_19 : f32 to vector<8x128xf32>
    %45 = arith.addf %44, %43 : vector<8x128xf32>
    %46 = vector.extract_strided_slice %45 {offsets = [0, 0], sizes = [8, 32], strides = [1, 1]} : vector<8x128xf32> to vector<8x32xf32>
    %47 = vector.extract_strided_slice %45 {offsets = [0, 32], sizes = [8, 32], strides = [1, 1]} : vector<8x128xf32> to vector<8x32xf32>
    %48 = vector.extract_strided_slice %41 {offsets = [0, 64], sizes = [8, 32], strides = [1, 1]} : vector<8x128xf32> to vector<8x32xf32>
    %49 = vector.extract_strided_slice %45 {offsets = [0, 96], sizes = [8, 32], strides = [1, 1]} : vector<8x128xf32> to vector<8x32xf32>
    %50 = arith.index_cast %c1_i32 : i32 to index
    %c0_20 = arith.constant 0 : index
    %c0_21 = arith.constant 0 : index
    %51 = vector.load %arg4[%50, %c0_20, %c0_21] : memref<3x8x32xf32, #tpu.memory_space<vmem>>, vector<1x8x32xf32>
    %52 = vector.shape_cast %51 : vector<1x8x32xf32> to vector<8x32xf32>
    %53 = math.tanh %52 : vector<8x32xf32>
    %54 = arith.mulf %53, %49 : vector<8x32xf32>
    %55 = arith.mulf %52, %46 : vector<8x32xf32>
    %56 = arith.mulf %47, %48 : vector<8x32xf32>
    %57 = arith.addf %55, %56 : vector<8x32xf32>
    %58 = arith.index_cast %c1_i32 : i32 to index
    %c0_22 = arith.constant 0 : index
    %c0_23 = arith.constant 0 : index
    %59 = vector.load %arg6[%58, %c0_22, %c0_23] : memref<3x8x32xf32, #tpu.memory_space<vmem>>, vector<1x8x32xf32>
    %60 = vector.shape_cast %59 : vector<1x8x32xf32> to vector<8x32xf32>
    %61 = vector.shape_cast %57 : vector<8x32xf32> to vector<1x8x32xf32>
    tpu.vector_store %arg6[%58, %c0_22, %c0_23], %61 {strides = array<i32>} : memref<3x8x32xf32, #tpu.memory_space<vmem>>, vector<1x8x32xf32>,
    %c2_i32 = arith.constant 2 : i32
    %62 = arith.addf %0, %54 : vector<8x32xf32>
    %63 = arith.index_cast %c2_i32 : i32 to index
    %c0_24 = arith.constant 0 : index
    %c0_25 = arith.constant 0 : index
    %64 = vector.load %arg2[%63, %c0_24, %c0_25] : memref<3x32x128xf32, #tpu.memory_space<vmem>>, vector<1x32x128xf32>
    %65 = vector.shape_cast %64 : vector<1x32x128xf32> to vector<32x128xf32>
    %cst_26 = arith.constant dense<0.000000e+00> : vector<8x128xf32>
    %66 = tpu.matmul %62, %65, %cst_26 {dimension_numbers = #tpu.dot_dimension_numbers<[1], [0], [0], [1], [0, 0, 1, 1], [], []>} : vector<8x32xf32>, vector<32x128xf32>, vector<8x128xf32> -> vector<8x128xf32>
    %67 = arith.index_cast %c2_i32 : i32 to index
    %c0_27 = arith.constant 0 : index
    %c0_28 = arith.constant 0 : index
    %68 = vector.load %arg3[%67, %c0_27, %c0_28] : memref<3x8x128xf32, #tpu.memory_space<vmem>>, vector<1x8x128xf32>
    %69 = vector.shape_cast %68 : vector<1x8x128xf32> to vector<8x128xf32>
    %70 = arith.addf %66, %69 : vector<8x128xf32>
    %71 = math.tanh %70 : vector<8x128xf32>
    %cst_29 = arith.constant 5.000000e-01 : f32
    %72 = vector.broadcast %cst_29 : f32 to vector<8x128xf32>
    %73 = arith.mulf %72, %71 : vector<8x128xf32>
    %cst_30 = arith.constant 5.000000e-01 : f32
    %74 = vector.broadcast %cst_30 : f32 to vector<8x128xf32>
    %75 = arith.addf %74, %73 : vector<8x128xf32>
    %76 = vector.extract_strided_slice %75 {offsets = [0, 0], sizes = [8, 32], strides = [1, 1]} : vector<8x128xf32> to vector<8x32xf32>
    %77 = vector.extract_strided_slice %75 {offsets = [0, 32], sizes = [8, 32], strides = [1, 1]} : vector<8x128xf32> to vector<8x32xf32>
    %78 = vector.extract_strided_slice %71 {offsets = [0, 64], sizes = [8, 32], strides = [1, 1]} : vector<8x128xf32> to vector<8x32xf32>
    %79 = vector.extract_strided_slice %75 {offsets = [0, 96], sizes = [8, 32], strides = [1, 1]} : vector<8x128xf32> to vector<8x32xf32>
    %80 = arith.index_cast %c2_i32 : i32 to index
    %c0_31 = arith.constant 0 : index
    %c0_32 = arith.constant 0 : index
    %81 = vector.load %arg4[%80, %c0_31, %c0_32] : memref<3x8x32xf32, #tpu.memory_space<vmem>>, vector<1x8x32xf32>
    %82 = vector.shape_cast %81 : vector<1x8x32xf32> to vector<8x32xf32>
    %83 = math.tanh %82 : vector<8x32xf32>
    %84 = arith.mulf %83, %79 : vector<8x32xf32>
    %85 = arith.mulf %82, %76 : vector<8x32xf32>
    %86 = arith.mulf %77, %78 : vector<8x32xf32>
    %87 = arith.addf %85, %86 : vector<8x32xf32>
    %88 = arith.index_cast %c2_i32 : i32 to index
    %c0_33 = arith.constant 0 : index
    %c0_34 = arith.constant 0 : index
    %89 = vector.load %arg6[%88, %c0_33, %c0_34] : memref<3x8x32xf32, #tpu.memory_space<vmem>>, vector<1x8x32xf32>
    %90 = vector.shape_cast %89 : vector<1x8x32xf32> to vector<8x32xf32>
    %91 = vector.shape_cast %87 : vector<8x32xf32> to vector<1x8x32xf32>
    tpu.vector_store %arg6[%88, %c0_33, %c0_34], %91 {strides = array<i32>} : memref<3x8x32xf32, #tpu.memory_space<vmem>>, vector<1x8x32xf32>,
    %c3_i32 = arith.constant 3 : i32
    %c0_35 = arith.constant 0 : index
    %c0_36 = arith.constant 0 : index
    %92 = vector.load %arg5[%c0_35, %c0_36] : memref<8x32xf32, #tpu.memory_space<vmem>>, vector<8x32xf32>
    tpu.vector_store %arg5[%c0_35, %c0_36], %84 {strides = array<i32>} : memref<8x32xf32, #tpu.memory_space<vmem>>, vector<8x32xf32>,
    return
  }
}

</mosaic_0001>

<bundles_post_ra>
// kernel: lstm_layer_forward.1
= control target key start
LH: loop header
LB: loop body
LE: loop exit
PB: predicated region body
PF: predicated region fallthrough
CT: control target
= control target key end

     0   :  { %12 = vsyncpa [#allocation3], 0  ;;  %s486_s0 = inlined_call_operand.vmem [shape: f32[8,32], index: 0, kind: input, shape index: {}]   ;;  %s487_s1 = inlined_call_operand.vmem [shape: f32[8,32], index: 1, kind: input, shape index: {}]   ;;  %s488_s2 = inlined_call_operand.hbm [shape: f32[3,32,128], index: 2, kind: input, shape index: {}]   ;;  %s489_s3 = inlined_call_operand.vmem [shape: f32[3,8,128], index: 3, kind: input, shape index: {}]   ;;  %s490_s4 = inlined_call_operand.hbm [shape: f32[3,8,32], index: 4, kind: input, shape index: {}, may-alias: {4,6}]   ;;  %s491_s5 = inlined_call_operand.hbm [shape: f32[8,32], index: 5, kind: output, shape index: {0}]   ;;  %s492_s6 = inlined_call_operand.hbm [shape: f32[3,8,32], index: 6, kind: output, shape index: {1}, may-alias: {4,6}]  }
   0x1   :  { %13 = vsyncpa [#allocation6], 0 }
   0x2   :  { %14 = vsyncpa [#allocation4], 0 }
   0x3   :  { %15 = vsyncpa [#allocation9], 0  ;;  %s24_s23 = sshll.u32 %s488_s2, 4  ;;  %s386_s24 = smov [#allocation2]   ;;  %s25_s23 = int_to_ptr.hbm [resolvable:$true] %s24_s23 }
   0x4   :  { %s26_s25 = sshll.u32 %s386_s24, 4  ;;  %s39_s28 = sshll.u32 %s490_s4, 4  ;;  %s27_s25 = int_to_ptr.vmem [resolvable:$true] %s26_s25  ;;  %s40_s28 = int_to_ptr.hbm [resolvable:$true] %s39_s28 }
   0x5   :  { %s387_s29 = smov 128   ;;  %s388_s30 = smov 8  }
   0x6   :  { %32 = dma.hbm_to_vmem [thread:$0]  %s25_s23, 1536, %s27_s25, [#allocation3], %s387_s29, %s387_s29, %s388_s30  }
   0x7   :  { %s389_s7 = smov [#allocation5]  }
   0x8   :  { %s41_s8 = sshll.u32 %s389_s7, 4  ;;  %s42_s8 = int_to_ptr.vmem [resolvable:$true] %s41_s8 }
   0x9   :  { %47 = dma.hbm_to_vmem [thread:$0]  %s40_s28, 384, %s42_s8, [#allocation6], %s387_s29, %s387_s29, %s388_s30  }
   0xa   :  { %378 = dma.done.wait [#allocation3], 1536  }
   0xb   :  { %379 = vsyncadd [#allocation3], 4294965760 }
   0xc   :  { %380 = dma.done.wait [#allocation6], 384  }
   0xd   :  { %381 = vsyncadd [#allocation6], 4294966912  ;;  %v62_v0 = vld [vmem:[#allocation2 + $0x18] sm:$0xff]  ;;  %v61_v1 = vld [vmem:[#allocation2 + $0x10] sm:$0xff]  ;;  %vm64_vm0 = vcmask 261120   ;;  %s228_s20 = sshll.u32 %s491_s5, 4  ;;  %s229_s20 = int_to_ptr.hbm [resolvable:$true] %s228_s20 }
   0xe   :  { %80 = vmatpush.msra.mxu0 %v62_v0  ;;  %v56_v2 = vld [vmem:[%s486_s0] sm:$0xff]  ;;  %v60_v4 = vld [vmem:[#allocation2 + $0x8] sm:$0xff]  ;;  %s390_s0 = smov 96   ;;  %v115_v13 = vld [vmem:[#allocation2 + $0x38] sm:$0xff]  ;;  %s393_s21 = smov [#allocation8]  }
   0xf   :  { %v57_v3 = vld [vmem:[%s487_s1] sm:$0xff]  ;;  %s391_s1 = smov 32   ;;  %v114_v14 = vld [vmem:[#allocation2 + $0x30] sm:$0xff]  ;;  %133 = vmatpush.msra.mxu1 %v115_v13  ;;  %v113_v15 = vld [vmem:[#allocation2 + $0x28] sm:$0xff]  ;;  %s236_s22 = sshll.u32 %s393_s21, 4  ;;  %s237_s22 = int_to_ptr.vmem [resolvable:$true] %s236_s22 }
  0x10   :  { %81 = vmatpush.msra.mxu0 %v61_v1  ;;  %v59_v5 = vld [vmem:[#allocation2] sm:$0xff]  ;;  %v58_v6 = vadd.f32 %v57_v3, %v56_v2  ;;  %v258_v22 = vld [vmem:[%s489_s3 + $0x8] sm:$0xff]  ;;  %v170_v28 = vld [vmem:[#allocation2 + $0x58] sm:$0xff]  ;;  %s238_s25 = sshll.u32 %s492_s6, 4  ;;  %s239_s25 = int_to_ptr.hbm [resolvable:$true] %s238_s25 }
  0x11   :  { %v63_v7 = vld [vmem:[%s489_s3] sm:$0xff]  ;;  %134 = vmatpush.msra.mxu1 %v114_v14  ;;  %188 = vmatpush.msra.mxu2 %v170_v28  ;;  %v169_v29 = vld [vmem:[#allocation2 + $0x50] sm:$0xff]  ;;  %v168_v30 = vld [vmem:[#allocation2 + $0x48] sm:$0xff] }
  0x12   :  { %82 = vmatpush.msra.mxu0 %v60_v4  ;;  %v112_v16 = vld [vmem:[#allocation2 + $0x20] sm:$0xff]  ;;  %v145_v33 = vld [vmem:[#allocation5 + $0x8] sm:$0xff]  ;;  %v260_v43 = vld [vmem:[%s489_s3 + $0x10] sm:$0xff]  ;;  %s392_s3 = smov [#allocation7]  }
  0x13   :  { %135 = vmatpush.msra.mxu1 %v113_v15  ;;  %v91_v17 = vld [vmem:[#allocation5] sm:$0xff]  ;;  %189 = vmatpush.msra.mxu2 %v169_v29  ;;  %v200_v55 = vld [vmem:[#allocation5 + $0x10] sm:$0xff]  ;;  %s226_s17 = sshll.u32 %s392_s3, 4  ;;  %s227_s17 = int_to_ptr.vmem [resolvable:$true] %s226_s17 }
  0x14   :  { %83 = vmatpush.msra.mxu0 %v59_v5  ;;  %v167_v31 = vld [vmem:[#allocation2 + $0x40] sm:$0xff] }
  0x15   :  { %257 = vmatmul.msk.f32.vlgmr.msra.gmra.mxu0 %vm64_vm0, %v58_v6  ;;  %136 = vmatpush.msra.mxu1 %v112_v16 }
  0x16   :  { %190 = vmatpush.msra.mxu2 %v168_v30 }
  0x18   :  { %191 = vmatpush.msra.mxu2 %v167_v31 }
  0x92   :  { %v85_v8 = vpop.f32.mrf.mxu0 }
  0x93   :  { %v86_v9 = vadd.f32 %v85_v8, %v63_v7 }
  0x95   :  { %270 = vtanh.f32 %v86_v9 }
  0x96   :  { %272 = vtanh.f32 %v91_v17 }
  0x9b   :  { %v271_v10 = vpop.eup %270 }
  0x9c   :  { %100 = vrot.lane.b32.xlu1 %v271_v10, %s390_s0  ;;  %v89_v11 = vmul.f32 0.5, %v271_v10  ;;  %v273_v18 = vpop.eup %272 }
  0x9e   :  { %v452_v12 = vadd.f32 0.5, %v89_v11 }
  0xa0   :  { %94 = vrot.lane.b32.xlu0 %v452_v12, %s391_s1  ;;  %v98_v52 = vmul.f32 %v91_v17, %v452_v12 }
 0x10e   :  { %v101_v32 = vpop.permute.xlu1 %100 }
 0x10f   :  { %v103_v49 = vmul.f32 %v101_v32, %v452_v12 }
 0x112   :  { %v95_v19 = vpop.permute.xlu0 %94 }
 0x113   :  { %v97_v20 = vmul.f32 %v273_v18, %v95_v19 }
 0x115   :  { %v110_v21 = vadd.f32 %v97_v20, %v56_v2 }
 0x117   :  { %259 = vmatmul.msk.f32.vlgmr.msra.gmra.mxu1 %vm64_vm0, %v110_v21 }
 0x194   :  { %v138_v23 = vpop.f32.mrf.mxu1 }
 0x195   :  { %v139_v24 = vadd.f32 %v258_v22, %v138_v23 }
 0x197   :  { %274 = vtanh.f32 %v139_v24 }
 0x198   :  { %276 = vtanh.f32 %v145_v33 }
 0x19d   :  { %v275_v25 = vpop.eup %274 }
 0x19e   :  { %154 = vrot.lane.b32.xlu1 %v275_v25, %s390_s0  ;;  %v142_v26 = vmul.f32 0.5, %v275_v25  ;;  %v277_v36 = vpop.eup %276 }
 0x1a0   :  { %v143_v27 = vadd.f32 0.5, %v142_v26 }
 0x1a2   :  { %148 = vrot.lane.b32.xlu0 %v143_v27, %s391_s1  ;;  %v152_v40 = vmul.f32 %v145_v33, %v143_v27 }
 0x210   :  { %v155_v34 = vpop.permute.xlu1 %154 }
 0x211   :  { %v157_v35 = vmul.f32 %v155_v34, %v143_v27 }
 0x213   :  { %159 = vrot.lane.b32.xlu0 %v157_v35, %s390_s0 }
 0x214   :  { %v149_v37 = vpop.permute.xlu0 %148 }
 0x215   :  { %v151_v38 = vmul.f32 %v277_v36, %v149_v37 }
 0x217   :  { %v165_v39 = vadd.f32 %v151_v38, %v56_v2 }
 0x219   :  { %261 = vmatmul.msk.f32.vlgmr.msra.gmra.mxu2 %vm64_vm0, %v165_v39 }
 0x285   :  { %v160_v41 = vpop.permute.xlu0 %159 }
 0x286   :  { %v162_v42 = vadd.f32 %v160_v41, %v152_v40 }
 0x288   :  { %164 = vst.msk [vmem:[#allocation8 + $0x8] sm:$0xff] %vm64_vm0, %v162_v42 }
 0x29c   :  { %v193_v44 = vpop.f32.mrf.mxu2 }
 0x29d   :  { %v194_v45 = vadd.f32 %v260_v43, %v193_v44 }
 0x29f   :  { %278 = vtanh.f32 %v194_v45 }
 0x2a0   :  { %280 = vtanh.f32 %v200_v55 }
 0x2a5   :  { %v279_v46 = vpop.eup %278 }
 0x2a6   :  { %209 = vrot.lane.b32.xlu2 %v279_v46, %s390_s0  ;;  %v197_v47 = vmul.f32 0.5, %v279_v46  ;;  %v281_v56 = vpop.eup %280 }
 0x2a8   :  { %v198_v48 = vadd.f32 0.5, %v197_v47 }
 0x2aa   :  { %203 = vrot.lane.b32.xlu1 %v198_v48, %s391_s1  ;;  %v207_v59 = vmul.f32 %v200_v55, %v198_v48 }
 0x2ae   :  { %105 = vrot.lane.b32.xlu2 %v103_v49, %s390_s0 }
 0x300   :  { %v210_v50 = vpop.permute.xlu2 %209 }
 0x301   :  { %v212_v51 = vmul.f32 %v210_v50, %v198_v48 }
 0x303   :  { %214 = vrot.lane.b32.xlu2 %v212_v51, %s390_s0 }
 0x308   :  { %v106_v53 = vpop.permute.xlu2 %105 }
 0x309   :  { %v108_v54 = vadd.f32 %v106_v53, %v98_v52 }
 0x30b   :  { %109 = vst.msk [vmem:[#allocation8] sm:$0xff] %vm64_vm0, %v108_v54 }
 0x31c   :  { %v204_v57 = vpop.permute.xlu1 %203 }
 0x31d   :  { %v206_v58 = vmul.f32 %v281_v56, %v204_v57 }
 0x31f   :  { %220 = vst.msk [vmem:[#allocation7] sm:$0xff] %vm64_vm0, %v206_v58 }
 0x320   :  { %231 = dma.vmem_to_hbm [thread:$0]  %s227_s17, 128, %s229_s20, [#allocation4]  }
 0x35d   :  { %v215_v60 = vpop.permute.xlu2 %214 }
 0x35e   :  { %v217_v61 = vadd.f32 %v215_v60, %v207_v59 }
 0x360   :  { %219 = vst.msk [vmem:[#allocation8 + $0x10] sm:$0xff] %vm64_vm0, %v217_v61 }
 0x361   :  { %244 = dma.vmem_to_hbm [thread:$0]  %s237_s22, 384, %s239_s25, [#allocation9], %s387_s29, %s387_s29, %s388_s30  }
 0x362   :  { %382 = dma.done.wait [#allocation4], 128  }
 0x363   :  { %383 = vsyncadd [#allocation4], 4294967168 }
 0x364   :  { %384 = dma.done.wait [#allocation9], 384  }
 0x365   :  { %385 = vsyncadd [#allocation9], 4294966912 }
 0x366   :  { %253 = vsyncpa [#allocation3], 1 }
 0x367   :  { %254 = vsyncpa [#allocation6], 1 }
 0x368   :  { %255 = vsyncpa [#allocation4], 1 }
 0x369   :  { %256 = vsyncpa [#allocation9], 1 }

</bundles_post_ra>
